<compile_context>
chip_gen: v5e
topology: v5e:2x2
jax: 0.10.0
libtpu: 0.0.40
codegen_flags: <defaults>
</compile_context>

<pallas_src>
import jax
import jax.numpy as jnp
from jax.experimental import pallas as pl
from jax.experimental.pallas import tpu as pltpu

IN_FEATURES = 6
HIDDEN = 10

_LANE_TILE = 1024          # minimum batch tile: one dense (8, 128) f32 vreg block
_DEFAULT_MAX_TB = 131072   # ~7 MiB double-buffered VMEM -> safe on v5e/v6e/v7x


def _round_up(v, m):
    return ((v + m - 1) // m) * m


def _choose_tiling(batch, max_tb):
    """Pick (n_tiles, tb): tb multiple of 1024, tb <= max_tb, n_tiles*tb >= batch."""
    n_tiles = pl.cdiv(batch, max_tb)
    # Keep >= 2 grid steps when there is enough work so the "parallel" grid
    # axis can feed both TensorCores on v7x (harmless on single-TC v5e/v6e).
    if n_tiles < 2 and batch >= 2 * _LANE_TILE:
        n_tiles = 2
    tb = _round_up(pl.cdiv(batch, n_tiles), _LANE_TILE)
    return n_tiles, tb


def mlp_kernel(x_ref, w1_ref, b1_ref, w2_ref, b2_ref, o_ref):
    # x_ref : (6, 1, 8, L) f32 VMEM   -- one batch tile; batch dense on the
    #                                    (sublane, lane) = (8, L) axes, L = TB//8
    # w1_ref: (6, 10) f32 SMEM        b1_ref: (10,) f32 SMEM
    # w2_ref: (10,)   f32 SMEM        b2_ref: (1,)  f32 SMEM
    # o_ref : (1, 8, L) f32 VMEM      -- sublane/lane-dense output tile
    rows = [x_ref[k, 0, :, :] for k in range(IN_FEATURES)]   # each (8, L)

    # y = b2 + sum_j w2[j] * relu(b1[j] + sum_k w1[k, j] * x[k])
    # Unrolled VPU broadcast-FMAs; tiny K does not justify an MXU round-trip
    # in full f32 precision.
    y = None
    for j in range(HIDDEN):
        h = rows[0] * w1_ref[0, j] + b1_ref[j]
        for k in range(1, IN_FEATURES):
            h = h + rows[k] * w1_ref[k, j]
        h = jnp.maximum(h, 0.0)                     # ReLU
        y = h * w2_ref[j] if y is None else y + h * w2_ref[j]
    o_ref[0, :, :] = y + b2_ref[0]


def mlp_forward_feature_major(x_fm, w1, b1, w2, b2, *, max_tb=_DEFAULT_MAX_TB):
    """Core entry point. x_fm: (6, B) f32 feature-major. Returns (B, 1) f32."""
    f, batch = x_fm.shape
    assert f == IN_FEATURES
    n_tiles, tb = _choose_tiling(batch, max_tb)
    b_pad = n_tiles * tb
    lanes = tb // 8

    if b_pad != batch:                              # pad only the ragged tail
        x_fm = jnp.pad(x_fm, ((0, 0), (0, b_pad - batch)))
    # Free row-major relabel: (6, B_pad) -> (6, n_tiles, 8, TB/8).
    x_tiles = x_fm.reshape(f, n_tiles, 8, lanes)

    out = pl.pallas_call(
        mlp_kernel,
        out_shape=jax.ShapeDtypeStruct((n_tiles, 8, lanes), jnp.float32),
        grid=(n_tiles,),
        in_specs=[
            pl.BlockSpec((f, 1, 8, lanes), lambda i: (0, i, 0, 0)),   # x tile (pipelined)
            pl.BlockSpec(memory_space=pltpu.MemorySpace.SMEM),        # w1 (resident)
            pl.BlockSpec(memory_space=pltpu.MemorySpace.SMEM),        # b1
            pl.BlockSpec(memory_space=pltpu.MemorySpace.SMEM),        # w2
            pl.BlockSpec(memory_space=pltpu.MemorySpace.SMEM),        # b2
        ],
        out_specs=pl.BlockSpec((1, 8, lanes), lambda i: (i, 0, 0)),
        compiler_params=pltpu.CompilerParams(
            dimension_semantics=("parallel",),
        ),
    )(x_tiles, w1, b1, w2, b2)

    # Free relabel back to (B_pad,), drop padded tail, restore (B, 1).
    return out.reshape(b_pad)[:batch].reshape(batch, 1)


def mlp_forward(x, w1, b1, w2, b2, *, max_tb=_DEFAULT_MAX_TB):
    """PyTorch-interface wrapper: x (B, 6) -> (B, 1).

    Does one transpose to feature-major; callers that can provide/cache
    feature-major (6, B) data should use mlp_forward_feature_major directly
    and skip that relayout entirely.
    """
    return mlp_forward_feature_major(x.T, w1, b1, w2, b2, max_tb=max_tb)


def init_params(key):
    # Mimic nn.Linear's uniform(-1/sqrt(fan_in), +1/sqrt(fan_in)) init.
    k1, k2, k3, k4 = jax.random.split(key, 4)
    bound1 = 1.0 / jnp.sqrt(float(IN_FEATURES))
    bound2 = 1.0 / jnp.sqrt(float(HIDDEN))
    w1 = jax.random.uniform(k1, (IN_FEATURES, HIDDEN), jnp.float32, -bound1, bound1)
    b1 = jax.random.uniform(k2, (HIDDEN,), jnp.float32, -bound1, bound1)
    w2 = jax.random.uniform(k3, (HIDDEN,), jnp.float32, -bound2, bound2)
    b2 = jax.random.uniform(k4, (1,), jnp.float32, -bound2, bound2)
    return w1, b1, w2, b2


if __name__ == "__main__":
    key = jax.random.PRNGKey(0)
    kx, kp = jax.random.split(key)
    w1, b1, w2, b2 = init_params(kp)

    # The model consumes length-6 windows of the GS10 series: input (B, 6).
    # B=600 exercises the single-step clamped-tile path; B=3000 exercises a
    # 2-step pipelined grid with a padded ragged tail.
    for B in (600, 3000):
        x = jax.random.normal(jax.random.fold_in(kx, B), (B, IN_FEATURES), jnp.float32)

        out = jax.block_until_ready(mlp_forward(x, w1, b1, w2, b2))

        # Pure-JAX reference (same as the PyTorch forward).
        ref = jnp.maximum(x @ w1 + b1[None, :], 0.0) @ w2.reshape(HIDDEN, 1) + b2
        assert out.shape == (B, 1)
        max_err = float(jnp.max(jnp.abs(out - ref)))
        assert jnp.allclose(out, ref, atol=1e-5, rtol=1e-5), max_err

    print("KERNEL_OK")
</pallas_src>

<mosaic_0001>
module attributes {stable_mosaic.version = 11 : i64} {
  func.func @mlp_kernel(%arg0: i32, %arg1: memref<6x1x8x128xf32, #tpu.memory_space<vmem>>, %arg2: memref<6x10xf32, #tpu.memory_space<smem>>, %arg3: memref<10xf32, #tpu.memory_space<smem>>, %arg4: memref<10xf32, #tpu.memory_space<smem>>, %arg5: memref<1xf32, #tpu.memory_space<smem>>, %arg6: memref<1x8x128xf32, #tpu.memory_space<vmem>>) attributes {dimension_semantics = [#tpu.dimension_semantics<parallel>], iteration_bounds = array<i64: 1>, scalar_prefetch = 0 : i64, scratch_operands = 0 : i64, tpu.core_type = #tpu.core_type<tc>, window_params = [{transform_indices = @transform_0, window_bounds = array<i64: 6, 1, 8, 128>}, {transform_indices = @transform_1, window_bounds = array<i64: 6, 10>}, {transform_indices = @transform_2, window_bounds = array<i64: 10>}, {transform_indices = @transform_3, window_bounds = array<i64: 10>}, {transform_indices = @transform_4, window_bounds = array<i64: 1>}, {transform_indices = @transform_5, window_bounds = array<i64: 1, 8, 128>}]} {
    %c0 = arith.constant 0 : index
    %c0_0 = arith.constant 0 : index
    %c0_1 = arith.constant 0 : index
    %c0_2 = arith.constant 0 : index
    %0 = vector.load %arg1[%c0, %c0_0, %c0_1, %c0_2] : memref<6x1x8x128xf32, #tpu.memory_space<vmem>>, vector<1x1x8x128xf32>
    %1 = vector.shape_cast %0 : vector<1x1x8x128xf32> to vector<8x128xf32>
    %c1 = arith.constant 1 : index
    %c0_3 = arith.constant 0 : index
    %c0_4 = arith.constant 0 : index
    %c0_5 = arith.constant 0 : index
    %2 = vector.load %arg1[%c1, %c0_3, %c0_4, %c0_5] : memref<6x1x8x128xf32, #tpu.memory_space<vmem>>, vector<1x1x8x128xf32>
    %3 = vector.shape_cast %2 : vector<1x1x8x128xf32> to vector<8x128xf32>
    %c2 = arith.constant 2 : index
    %c0_6 = arith.constant 0 : index
    %c0_7 = arith.constant 0 : index
    %c0_8 = arith.constant 0 : index
    %4 = vector.load %arg1[%c2, %c0_6, %c0_7, %c0_8] : memref<6x1x8x128xf32, #tpu.memory_space<vmem>>, vector<1x1x8x128xf32>
    %5 = vector.shape_cast %4 : vector<1x1x8x128xf32> to vector<8x128xf32>
    %c3 = arith.constant 3 : index
    %c0_9 = arith.constant 0 : index
    %c0_10 = arith.constant 0 : index
    %c0_11 = arith.constant 0 : index
    %6 = vector.load %arg1[%c3, %c0_9, %c0_10, %c0_11] : memref<6x1x8x128xf32, #tpu.memory_space<vmem>>, vector<1x1x8x128xf32>
    %7 = vector.shape_cast %6 : vector<1x1x8x128xf32> to vector<8x128xf32>
    %c4 = arith.constant 4 : index
    %c0_12 = arith.constant 0 : index
    %c0_13 = arith.constant 0 : index
    %c0_14 = arith.constant 0 : index
    %8 = vector.load %arg1[%c4, %c0_12, %c0_13, %c0_14] : memref<6x1x8x128xf32, #tpu.memory_space<vmem>>, vector<1x1x8x128xf32>
    %9 = vector.shape_cast %8 : vector<1x1x8x128xf32> to vector<8x128xf32>
    %c5 = arith.constant 5 : index
    %c0_15 = arith.constant 0 : index
    %c0_16 = arith.constant 0 : index
    %c0_17 = arith.constant 0 : index
    %10 = vector.load %arg1[%c5, %c0_15, %c0_16, %c0_17] : memref<6x1x8x128xf32, #tpu.memory_space<vmem>>, vector<1x1x8x128xf32>
    %11 = vector.shape_cast %10 : vector<1x1x8x128xf32> to vector<8x128xf32>
    %c0_18 = arith.constant 0 : index
    %c0_19 = arith.constant 0 : index
    %12 = memref.load %arg2[%c0_18, %c0_19] : memref<6x10xf32, #tpu.memory_space<smem>>
    %13 = vector.broadcast %12 : f32 to vector<8x128xf32>
    %14 = arith.mulf %1, %13 : vector<8x128xf32>
    %c0_20 = arith.constant 0 : index
    %15 = memref.load %arg3[%c0_20] : memref<10xf32, #tpu.memory_space<smem>>
    %16 = vector.broadcast %15 : f32 to vector<8x128xf32>
    %17 = arith.addf %14, %16 : vector<8x128xf32>
    %c1_21 = arith.constant 1 : index
    %c0_22 = arith.constant 0 : index
    %18 = memref.load %arg2[%c1_21, %c0_22] : memref<6x10xf32, #tpu.memory_space<smem>>
    %19 = vector.broadcast %18 : f32 to vector<8x128xf32>
    %20 = arith.mulf %3, %19 : vector<8x128xf32>
    %21 = arith.addf %17, %20 : vector<8x128xf32>
    %c2_23 = arith.constant 2 : index
    %c0_24 = arith.constant 0 : index
    %22 = memref.load %arg2[%c2_23, %c0_24] : memref<6x10xf32, #tpu.memory_space<smem>>
    %23 = vector.broadcast %22 : f32 to vector<8x128xf32>
    %24 = arith.mulf %5, %23 : vector<8x128xf32>
    %25 = arith.addf %21, %24 : vector<8x128xf32>
    %c3_25 = arith.constant 3 : index
    %c0_26 = arith.constant 0 : index
    %26 = memref.load %arg2[%c3_25, %c0_26] : memref<6x10xf32, #tpu.memory_space<smem>>
    %27 = vector.broadcast %26 : f32 to vector<8x128xf32>
    %28 = arith.mulf %7, %27 : vector<8x128xf32>
    %29 = arith.addf %25, %28 : vector<8x128xf32>
    %c4_27 = arith.constant 4 : index
    %c0_28 = arith.constant 0 : index
    %30 = memref.load %arg2[%c4_27, %c0_28] : memref<6x10xf32, #tpu.memory_space<smem>>
    %31 = vector.broadcast %30 : f32 to vector<8x128xf32>
    %32 = arith.mulf %9, %31 : vector<8x128xf32>
    %33 = arith.addf %29, %32 : vector<8x128xf32>
    %c5_29 = arith.constant 5 : index
    %c0_30 = arith.constant 0 : index
    %34 = memref.load %arg2[%c5_29, %c0_30] : memref<6x10xf32, #tpu.memory_space<smem>>
    %35 = vector.broadcast %34 : f32 to vector<8x128xf32>
    %36 = arith.mulf %11, %35 : vector<8x128xf32>
    %37 = arith.addf %33, %36 : vector<8x128xf32>
    %cst = arith.constant 0.000000e+00 : f32
    %38 = vector.broadcast %cst : f32 to vector<8x128xf32>
    %39 = arith.maximumf %37, %38 : vector<8x128xf32>
    %c0_31 = arith.constant 0 : index
    %40 = memref.load %arg4[%c0_31] : memref<10xf32, #tpu.memory_space<smem>>
    %41 = vector.broadcast %40 : f32 to vector<8x128xf32>
    %42 = arith.mulf %39, %41 : vector<8x128xf32>
    %c0_32 = arith.constant 0 : index
    %c1_33 = arith.constant 1 : index
    %43 = memref.load %arg2[%c0_32, %c1_33] : memref<6x10xf32, #tpu.memory_space<smem>>
    %44 = vector.broadcast %43 : f32 to vector<8x128xf32>
    %45 = arith.mulf %1, %44 : vector<8x128xf32>
    %c1_34 = arith.constant 1 : index
    %46 = memref.load %arg3[%c1_34] : memref<10xf32, #tpu.memory_space<smem>>
    %47 = vector.broadcast %46 : f32 to vector<8x128xf32>
    %48 = arith.addf %45, %47 : vector<8x128xf32>
    %c1_35 = arith.constant 1 : index
    %c1_36 = arith.constant 1 : index
    %49 = memref.load %arg2[%c1_35, %c1_36] : memref<6x10xf32, #tpu.memory_space<smem>>
    %50 = vector.broadcast %49 : f32 to vector<8x128xf32>
    %51 = arith.mulf %3, %50 : vector<8x128xf32>
    %52 = arith.addf %48, %51 : vector<8x128xf32>
    %c2_37 = arith.constant 2 : index
    %c1_38 = arith.constant 1 : index
    %53 = memref.load %arg2[%c2_37, %c1_38] : memref<6x10xf32, #tpu.memory_space<smem>>
    %54 = vector.broadcast %53 : f32 to vector<8x128xf32>
    %55 = arith.mulf %5, %54 : vector<8x128xf32>
    %56 = arith.addf %52, %55 : vector<8x128xf32>
    %c3_39 = arith.constant 3 : index
    %c1_40 = arith.constant 1 : index
    %57 = memref.load %arg2[%c3_39, %c1_40] : memref<6x10xf32, #tpu.memory_space<smem>>
    %58 = vector.broadcast %57 : f32 to vector<8x128xf32>
    %59 = arith.mulf %7, %58 : vector<8x128xf32>
    %60 = arith.addf %56, %59 : vector<8x128xf32>
    %c4_41 = arith.constant 4 : index
    %c1_42 = arith.constant 1 : index
    %61 = memref.load %arg2[%c4_41, %c1_42] : memref<6x10xf32, #tpu.memory_space<smem>>
    %62 = vector.broadcast %61 : f32 to vector<8x128xf32>
    %63 = arith.mulf %9, %62 : vector<8x128xf32>
    %64 = arith.addf %60, %63 : vector<8x128xf32>
    %c5_43 = arith.constant 5 : index
    %c1_44 = arith.constant 1 : index
    %65 = memref.load %arg2[%c5_43, %c1_44] : memref<6x10xf32, #tpu.memory_space<smem>>
    %66 = vector.broadcast %65 : f32 to vector<8x128xf32>
    %67 = arith.mulf %11, %66 : vector<8x128xf32>
    %68 = arith.addf %64, %67 : vector<8x128xf32>
    %cst_45 = arith.constant 0.000000e+00 : f32
    %69 = vector.broadcast %cst_45 : f32 to vector<8x128xf32>
    %70 = arith.maximumf %68, %69 : vector<8x128xf32>
    %c1_46 = arith.constant 1 : index
    %71 = memref.load %arg4[%c1_46] : memref<10xf32, #tpu.memory_space<smem>>
    %72 = vector.broadcast %71 : f32 to vector<8x128xf32>
    %73 = arith.mulf %70, %72 : vector<8x128xf32>
    %74 = arith.addf %42, %73 : vector<8x128xf32>
    %c0_47 = arith.constant 0 : index
    %c2_48 = arith.constant 2 : index
    %75 = memref.load %arg2[%c0_47, %c2_48] : memref<6x10xf32, #tpu.memory_space<smem>>
    %76 = vector.broadcast %75 : f32 to vector<8x128xf32>
    %77 = arith.mulf %1, %76 : vector<8x128xf32>
    %c2_49 = arith.constant 2 : index
    %78 = memref.load %arg3[%c2_49] : memref<10xf32, #tpu.memory_space<smem>>
    %79 = vector.broadcast %78 : f32 to vector<8x128xf32>
    %80 = arith.addf %77, %79 : vector<8x128xf32>
    %c1_50 = arith.constant 1 : index
    %c2_51 = arith.constant 2 : index
    %81 = memref.load %arg2[%c1_50, %c2_51] : memref<6x10xf32, #tpu.memory_space<smem>>
    %82 = vector.broadcast %81 : f32 to vector<8x128xf32>
    %83 = arith.mulf %3, %82 : vector<8x128xf32>
    %84 = arith.addf %80, %83 : vector<8x128xf32>
    %c2_52 = arith.constant 2 : index
    %c2_53 = arith.constant 2 : index
    %85 = memref.load %arg2[%c2_52, %c2_53] : memref<6x10xf32, #tpu.memory_space<smem>>
    %86 = vector.broadcast %85 : f32 to vector<8x128xf32>
    %87 = arith.mulf %5, %86 : vector<8x128xf32>
    %88 = arith.addf %84, %87 : vector<8x128xf32>
    %c3_54 = arith.constant 3 : index
    %c2_55 = arith.constant 2 : index
    %89 = memref.load %arg2[%c3_54, %c2_55] : memref<6x10xf32, #tpu.memory_space<smem>>
    %90 = vector.broadcast %89 : f32 to vector<8x128xf32>
    %91 = arith.mulf %7, %90 : vector<8x128xf32>
    %92 = arith.addf %88, %91 : vector<8x128xf32>
    %c4_56 = arith.constant 4 : index
    %c2_57 = arith.constant 2 : index
    %93 = memref.load %arg2[%c4_56, %c2_57] : memref<6x10xf32, #tpu.memory_space<smem>>
    %94 = vector.broadcast %93 : f32 to vector<8x128xf32>
    %95 = arith.mulf %9, %94 : vector<8x128xf32>
    %96 = arith.addf %92, %95 : vector<8x128xf32>
    %c5_58 = arith.constant 5 : index
    %c2_59 = arith.constant 2 : index
    %97 = memref.load %arg2[%c5_58, %c2_59] : memref<6x10xf32, #tpu.memory_space<smem>>
    %98 = vector.broadcast %97 : f32 to vector<8x128xf32>
    %99 = arith.mulf %11, %98 : vector<8x128xf32>
    %100 = arith.addf %96, %99 : vector<8x128xf32>
    %cst_60 = arith.constant 0.000000e+00 : f32
    %101 = vector.broadcast %cst_60 : f32 to vector<8x128xf32>
    %102 = arith.maximumf %100, %101 : vector<8x128xf32>
    %c2_61 = arith.constant 2 : index
    %103 = memref.load %arg4[%c2_61] : memref<10xf32, #tpu.memory_space<smem>>
    %104 = vector.broadcast %103 : f32 to vector<8x128xf32>
    %105 = arith.mulf %102, %104 : vector<8x128xf32>
    %106 = arith.addf %74, %105 : vector<8x128xf32>
    %c0_62 = arith.constant 0 : index
    %c3_63 = arith.constant 3 : index
    %107 = memref.load %arg2[%c0_62, %c3_63] : memref<6x10xf32, #tpu.memory_space<smem>>
    %108 = vector.broadcast %107 : f32 to vector<8x128xf32>
    %109 = arith.mulf %1, %108 : vector<8x128xf32>
    %c3_64 = arith.constant 3 : index
    %110 = memref.load %arg3[%c3_64] : memref<10xf32, #tpu.memory_space<smem>>
    %111 = vector.broadcast %110 : f32 to vector<8x128xf32>
    %112 = arith.addf %109, %111 : vector<8x128xf32>
    %c1_65 = arith.constant 1 : index
    %c3_66 = arith.constant 3 : index
    %113 = memref.load %arg2[%c1_65, %c3_66] : memref<6x10xf32, #tpu.memory_space<smem>>
    %114 = vector.broadcast %113 : f32 to vector<8x128xf32>
    %115 = arith.mulf %3, %114 : vector<8x128xf32>
    %116 = arith.addf %112, %115 : vector<8x128xf32>
    %c2_67 = arith.constant 2 : index
    %c3_68 = arith.constant 3 : index
    %117 = memref.load %arg2[%c2_67, %c3_68] : memref<6x10xf32, #tpu.memory_space<smem>>
    %118 = vector.broadcast %117 : f32 to vector<8x128xf32>
    %119 = arith.mulf %5, %118 : vector<8x128xf32>
    %120 = arith.addf %116, %119 : vector<8x128xf32>
    %c3_69 = arith.constant 3 : index
    %c3_70 = arith.constant 3 : index
    %121 = memref.load %arg2[%c3_69, %c3_70] : memref<6x10xf32, #tpu.memory_space<smem>>
    %122 = vector.broadcast %121 : f32 to vector<8x128xf32>
    %123 = arith.mulf %7, %122 : vector<8x128xf32>
    %124 = arith.addf %120, %123 : vector<8x128xf32>
    %c4_71 = arith.constant 4 : index
    %c3_72 = arith.constant 3 : index
    %125 = memref.load %arg2[%c4_71, %c3_72] : memref<6x10xf32, #tpu.memory_space<smem>>
    %126 = vector.broadcast %125 : f32 to vector<8x128xf32>
    %127 = arith.mulf %9, %126 : vector<8x128xf32>
    %128 = arith.addf %124, %127 : vector<8x128xf32>
    %c5_73 = arith.constant 5 : index
    %c3_74 = arith.constant 3 : index
    %129 = memref.load %arg2[%c5_73, %c3_74] : memref<6x10xf32, #tpu.memory_space<smem>>
    %130 = vector.broadcast %129 : f32 to vector<8x128xf32>
    %131 = arith.mulf %11, %130 : vector<8x128xf32>
    %132 = arith.addf %128, %131 : vector<8x128xf32>
    %cst_75 = arith.constant 0.000000e+00 : f32
    %133 = vector.broadcast %cst_75 : f32 to vector<8x128xf32>
    %134 = arith.maximumf %132, %133 : vector<8x128xf32>
    %c3_76 = arith.constant 3 : index
    %135 = memref.load %arg4[%c3_76] : memref<10xf32, #tpu.memory_space<smem>>
    %136 = vector.broadcast %135 : f32 to vector<8x128xf32>
    %137 = arith.mulf %134, %136 : vector<8x128xf32>
    %138 = arith.addf %106, %137 : vector<8x128xf32>
    %c0_77 = arith.constant 0 : index
    %c4_78 = arith.constant 4 : index
    %139 = memref.load %arg2[%c0_77, %c4_78] : memref<6x10xf32, #tpu.memory_space<smem>>
    %140 = vector.broadcast %139 : f32 to vector<8x128xf32>
    %141 = arith.mulf %1, %140 : vector<8x128xf32>
    %c4_79 = arith.constant 4 : index
    %142 = memref.load %arg3[%c4_79] : memref<10xf32, #tpu.memory_space<smem>>
    %143 = vector.broadcast %142 : f32 to vector<8x128xf32>
    %144 = arith.addf %141, %143 : vector<8x128xf32>
    %c1_80 = arith.constant 1 : index
    %c4_81 = arith.constant 4 : index
    %145 = memref.load %arg2[%c1_80, %c4_81] : memref<6x10xf32, #tpu.memory_space<smem>>
    %146 = vector.broadcast %145 : f32 to vector<8x128xf32>
    %147 = arith.mulf %3, %146 : vector<8x128xf32>
    %148 = arith.addf %144, %147 : vector<8x128xf32>
    %c2_82 = arith.constant 2 : index
    %c4_83 = arith.constant 4 : index
    %149 = memref.load %arg2[%c2_82, %c4_83] : memref<6x10xf32, #tpu.memory_space<smem>>
    %150 = vector.broadcast %149 : f32 to vector<8x128xf32>
    %151 = arith.mulf %5, %150 : vector<8x128xf32>
    %152 = arith.addf %148, %151 : vector<8x128xf32>
    %c3_84 = arith.constant 3 : index
    %c4_85 = arith.constant 4 : index
    %153 = memref.load %arg2[%c3_84, %c4_85] : memref<6x10xf32, #tpu.memory_space<smem>>
    %154 = vector.broadcast %153 : f32 to vector<8x128xf32>
    %155 = arith.mulf %7, %154 : vector<8x128xf32>
    %156 = arith.addf %152, %155 : vector<8x128xf32>
    %c4_86 = arith.constant 4 : index
    %c4_87 = arith.constant 4 : index
    %157 = memref.load %arg2[%c4_86, %c4_87] : memref<6x10xf32, #tpu.memory_space<smem>>
    %158 = vector.broadcast %157 : f32 to vector<8x128xf32>
    %159 = arith.mulf %9, %158 : vector<8x128xf32>
    %160 = arith.addf %156, %159 : vector<8x128xf32>
    %c5_88 = arith.constant 5 : index
    %c4_89 = arith.constant 4 : index
    %161 = memref.load %arg2[%c5_88, %c4_89] : memref<6x10xf32, #tpu.memory_space<smem>>
    %162 = vector.broadcast %161 : f32 to vector<8x128xf32>
    %163 = arith.mulf %11, %162 : vector<8x128xf32>
    %164 = arith.addf %160, %163 : vector<8x128xf32>
    %cst_90 = arith.constant 0.000000e+00 : f32
    %165 = vector.broadcast %cst_90 : f32 to vector<8x128xf32>
    %166 = arith.maximumf %164, %165 : vector<8x128xf32>
    %c4_91 = arith.constant 4 : index
    %167 = memref.load %arg4[%c4_91] : memref<10xf32, #tpu.memory_space<smem>>
    %168 = vector.broadcast %167 : f32 to vector<8x128xf32>
    %169 = arith.mulf %166, %168 : vector<8x128xf32>
    %170 = arith.addf %138, %169 : vector<8x128xf32>
    %c0_92 = arith.constant 0 : index
    %c5_93 = arith.constant 5 : index
    %171 = memref.load %arg2[%c0_92, %c5_93] : memref<6x10xf32, #tpu.memory_space<smem>>
    %172 = vector.broadcast %171 : f32 to vector<8x128xf32>
    %173 = arith.mulf %1, %172 : vector<8x128xf32>
    %c5_94 = arith.constant 5 : index
    %174 = memref.load %arg3[%c5_94] : memref<10xf32, #tpu.memory_space<smem>>
    %175 = vector.broadcast %174 : f32 to vector<8x128xf32>
    %176 = arith.addf %173, %175 : vector<8x128xf32>
    %c1_95 = arith.constant 1 : index
    %c5_96 = arith.constant 5 : index
    %177 = memref.load %arg2[%c1_95, %c5_96] : memref<6x10xf32, #tpu.memory_space<smem>>
    %178 = vector.broadcast %177 : f32 to vector<8x128xf32>
    %179 = arith.mulf %3, %178 : vector<8x128xf32>
    %180 = arith.addf %176, %179 : vector<8x128xf32>
    %c2_97 = arith.constant 2 : index
    %c5_98 = arith.constant 5 : index
    %181 = memref.load %arg2[%c2_97, %c5_98] : memref<6x10xf32, #tpu.memory_space<smem>>
    %182 = vector.broadcast %181 : f32 to vector<8x128xf32>
    %183 = arith.mulf %5, %182 : vector<8x128xf32>
    %184 = arith.addf %180, %183 : vector<8x128xf32>
    %c3_99 = arith.constant 3 : index
    %c5_100 = arith.constant 5 : index
    %185 = memref.load %arg2[%c3_99, %c5_100] : memref<6x10xf32, #tpu.memory_space<smem>>
    %186 = vector.broadcast %185 : f32 to vector<8x128xf32>
    %187 = arith.mulf %7, %186 : vector<8x128xf32>
    %188 = arith.addf %184, %187 : vector<8x128xf32>
    %c4_101 = arith.constant 4 : index
    %c5_102 = arith.constant 5 : index
    %189 = memref.load %arg2[%c4_101, %c5_102] : memref<6x10xf32, #tpu.memory_space<smem>>
    %190 = vector.broadcast %189 : f32 to vector<8x128xf32>
    %191 = arith.mulf %9, %190 : vector<8x128xf32>
    %192 = arith.addf %188, %191 : vector<8x128xf32>
    %c5_103 = arith.constant 5 : index
    %c5_104 = arith.constant 5 : index
    %193 = memref.load %arg2[%c5_103, %c5_104] : memref<6x10xf32, #tpu.memory_space<smem>>
    %194 = vector.broadcast %193 : f32 to vector<8x128xf32>
    %195 = arith.mulf %11, %194 : vector<8x128xf32>
    %196 = arith.addf %192, %195 : vector<8x128xf32>
    %cst_105 = arith.constant 0.000000e+00 : f32
    %197 = vector.broadcast %cst_105 : f32 to vector<8x128xf32>
    %198 = arith.maximumf %196, %197 : vector<8x128xf32>
    %c5_106 = arith.constant 5 : index
    %199 = memref.load %arg4[%c5_106] : memref<10xf32, #tpu.memory_space<smem>>
    %200 = vector.broadcast %199 : f32 to vector<8x128xf32>
    %201 = arith.mulf %198, %200 : vector<8x128xf32>
    %202 = arith.addf %170, %201 : vector<8x128xf32>
    %c0_107 = arith.constant 0 : index
    %c6 = arith.constant 6 : index
    %203 = memref.load %arg2[%c0_107, %c6] : memref<6x10xf32, #tpu.memory_space<smem>>
    %204 = vector.broadcast %203 : f32 to vector<8x128xf32>
    %205 = arith.mulf %1, %204 : vector<8x128xf32>
    %c6_108 = arith.constant 6 : index
    %206 = memref.load %arg3[%c6_108] : memref<10xf32, #tpu.memory_space<smem>>
    %207 = vector.broadcast %206 : f32 to vector<8x128xf32>
    %208 = arith.addf %205, %207 : vector<8x128xf32>
    %c1_109 = arith.constant 1 : index
    %c6_110 = arith.constant 6 : index
    %209 = memref.load %arg2[%c1_109, %c6_110] : memref<6x10xf32, #tpu.memory_space<smem>>
    %210 = vector.broadcast %209 : f32 to vector<8x128xf32>
    %211 = arith.mulf %3, %210 : vector<8x128xf32>
    %212 = arith.addf %208, %211 : vector<8x128xf32>
    %c2_111 = arith.constant 2 : index
    %c6_112 = arith.constant 6 : index
    %213 = memref.load %arg2[%c2_111, %c6_112] : memref<6x10xf32, #tpu.memory_space<smem>>
    %214 = vector.broadcast %213 : f32 to vector<8x128xf32>
    %215 = arith.mulf %5, %214 : vector<8x128xf32>
    %216 = arith.addf %212, %215 : vector<8x128xf32>
    %c3_113 = arith.constant 3 : index
    %c6_114 = arith.constant 6 : index
    %217 = memref.load %arg2[%c3_113, %c6_114] : memref<6x10xf32, #tpu.memory_space<smem>>
    %218 = vector.broadcast %217 : f32 to vector<8x128xf32>
    %219 = arith.mulf %7, %218 : vector<8x128xf32>
    %220 = arith.addf %216, %219 : vector<8x128xf32>
    %c4_115 = arith.constant 4 : index
    %c6_116 = arith.constant 6 : index
    %221 = memref.load %arg2[%c4_115, %c6_116] : memref<6x10xf32, #tpu.memory_space<smem>>
    %222 = vector.broadcast %221 : f32 to vector<8x128xf32>
    %223 = arith.mulf %9, %222 : vector<8x128xf32>
    %224 = arith.addf %220, %223 : vector<8x128xf32>
    %c5_117 = arith.constant 5 : index
    %c6_118 = arith.constant 6 : index
    %225 = memref.load %arg2[%c5_117, %c6_118] : memref<6x10xf32, #tpu.memory_space<smem>>
    %226 = vector.broadcast %225 : f32 to vector<8x128xf32>
    %227 = arith.mulf %11, %226 : vector<8x128xf32>
    %228 = arith.addf %224, %227 : vector<8x128xf32>
    %cst_119 = arith.constant 0.000000e+00 : f32
    %229 = vector.broadcast %cst_119 : f32 to vector<8x128xf32>
    %230 = arith.maximumf %228, %229 : vector<8x128xf32>
    %c6_120 = arith.constant 6 : index
    %231 = memref.load %arg4[%c6_120] : memref<10xf32, #tpu.memory_space<smem>>
    %232 = vector.broadcast %231 : f32 to vector<8x128xf32>
    %233 = arith.mulf %230, %232 : vector<8x128xf32>
    %234 = arith.addf %202, %233 : vector<8x128xf32>
    %c0_121 = arith.constant 0 : index
    %c7 = arith.constant 7 : index
    %235 = memref.load %arg2[%c0_121, %c7] : memref<6x10xf32, #tpu.memory_space<smem>>
    %236 = vector.broadcast %235 : f32 to vector<8x128xf32>
    %237 = arith.mulf %1, %236 : vector<8x128xf32>
    %c7_122 = arith.constant 7 : index
    %238 = memref.load %arg3[%c7_122] : memref<10xf32, #tpu.memory_space<smem>>
    %239 = vector.broadcast %238 : f32 to vector<8x128xf32>
    %240 = arith.addf %237, %239 : vector<8x128xf32>
    %c1_123 = arith.constant 1 : index
    %c7_124 = arith.constant 7 : index
    %241 = memref.load %arg2[%c1_123, %c7_124] : memref<6x10xf32, #tpu.memory_space<smem>>
    %242 = vector.broadcast %241 : f32 to vector<8x128xf32>
    %243 = arith.mulf %3, %242 : vector<8x128xf32>
    %244 = arith.addf %240, %243 : vector<8x128xf32>
    %c2_125 = arith.constant 2 : index
    %c7_126 = arith.constant 7 : index
    %245 = memref.load %arg2[%c2_125, %c7_126] : memref<6x10xf32, #tpu.memory_space<smem>>
    %246 = vector.broadcast %245 : f32 to vector<8x128xf32>
    %247 = arith.mulf %5, %246 : vector<8x128xf32>
    %248 = arith.addf %244, %247 : vector<8x128xf32>
    %c3_127 = arith.constant 3 : index
    %c7_128 = arith.constant 7 : index
    %249 = memref.load %arg2[%c3_127, %c7_128] : memref<6x10xf32, #tpu.memory_space<smem>>
    %250 = vector.broadcast %249 : f32 to vector<8x128xf32>
    %251 = arith.mulf %7, %250 : vector<8x128xf32>
    %252 = arith.addf %248, %251 : vector<8x128xf32>
    %c4_129 = arith.constant 4 : index
    %c7_130 = arith.constant 7 : index
    %253 = memref.load %arg2[%c4_129, %c7_130] : memref<6x10xf32, #tpu.memory_space<smem>>
    %254 = vector.broadcast %253 : f32 to vector<8x128xf32>
    %255 = arith.mulf %9, %254 : vector<8x128xf32>
    %256 = arith.addf %252, %255 : vector<8x128xf32>
    %c5_131 = arith.constant 5 : index
    %c7_132 = arith.constant 7 : index
    %257 = memref.load %arg2[%c5_131, %c7_132] : memref<6x10xf32, #tpu.memory_space<smem>>
    %258 = vector.broadcast %257 : f32 to vector<8x128xf32>
    %259 = arith.mulf %11, %258 : vector<8x128xf32>
    %260 = arith.addf %256, %259 : vector<8x128xf32>
    %cst_133 = arith.constant 0.000000e+00 : f32
    %261 = vector.broadcast %cst_133 : f32 to vector<8x128xf32>
    %262 = arith.maximumf %260, %261 : vector<8x128xf32>
    %c7_134 = arith.constant 7 : index
    %263 = memref.load %arg4[%c7_134] : memref<10xf32, #tpu.memory_space<smem>>
    %264 = vector.broadcast %263 : f32 to vector<8x128xf32>
    %265 = arith.mulf %262, %264 : vector<8x128xf32>
    %266 = arith.addf %234, %265 : vector<8x128xf32>
    %c0_135 = arith.constant 0 : index
    %c8 = arith.constant 8 : index
    %267 = memref.load %arg2[%c0_135, %c8] : memref<6x10xf32, #tpu.memory_space<smem>>
    %268 = vector.broadcast %267 : f32 to vector<8x128xf32>
    %269 = arith.mulf %1, %268 : vector<8x128xf32>
    %c8_136 = arith.constant 8 : index
    %270 = memref.load %arg3[%c8_136] : memref<10xf32, #tpu.memory_space<smem>>
    %271 = vector.broadcast %270 : f32 to vector<8x128xf32>
    %272 = arith.addf %269, %271 : vector<8x128xf32>
    %c1_137 = arith.constant 1 : index
    %c8_138 = arith.constant 8 : index
    %273 = memref.load %arg2[%c1_137, %c8_138] : memref<6x10xf32, #tpu.memory_space<smem>>
    %274 = vector.broadcast %273 : f32 to vector<8x128xf32>
    %275 = arith.mulf %3, %274 : vector<8x128xf32>
    %276 = arith.addf %272, %275 : vector<8x128xf32>
    %c2_139 = arith.constant 2 : index
    %c8_140 = arith.constant 8 : index
    %277 = memref.load %arg2[%c2_139, %c8_140] : memref<6x10xf32, #tpu.memory_space<smem>>
    %278 = vector.broadcast %277 : f32 to vector<8x128xf32>
    %279 = arith.mulf %5, %278 : vector<8x128xf32>
    %280 = arith.addf %276, %279 : vector<8x128xf32>
    %c3_141 = arith.constant 3 : index
    %c8_142 = arith.constant 8 : index
    %281 = memref.load %arg2[%c3_141, %c8_142] : memref<6x10xf32, #tpu.memory_space<smem>>
    %282 = vector.broadcast %281 : f32 to vector<8x128xf32>
    %283 = arith.mulf %7, %282 : vector<8x128xf32>
    %284 = arith.addf %280, %283 : vector<8x128xf32>
    %c4_143 = arith.constant 4 : index
    %c8_144 = arith.constant 8 : index
    %285 = memref.load %arg2[%c4_143, %c8_144] : memref<6x10xf32, #tpu.memory_space<smem>>
    %286 = vector.broadcast %285 : f32 to vector<8x128xf32>
    %287 = arith.mulf %9, %286 : vector<8x128xf32>
    %288 = arith.addf %284, %287 : vector<8x128xf32>
    %c5_145 = arith.constant 5 : index
    %c8_146 = arith.constant 8 : index
    %289 = memref.load %arg2[%c5_145, %c8_146] : memref<6x10xf32, #tpu.memory_space<smem>>
    %290 = vector.broadcast %289 : f32 to vector<8x128xf32>
    %291 = arith.mulf %11, %290 : vector<8x128xf32>
    %292 = arith.addf %288, %291 : vector<8x128xf32>
    %cst_147 = arith.constant 0.000000e+00 : f32
    %293 = vector.broadcast %cst_147 : f32 to vector<8x128xf32>
    %294 = arith.maximumf %292, %293 : vector<8x128xf32>
    %c8_148 = arith.constant 8 : index
    %295 = memref.load %arg4[%c8_148] : memref<10xf32, #tpu.memory_space<smem>>
    %296 = vector.broadcast %295 : f32 to vector<8x128xf32>
    %297 = arith.mulf %294, %296 : vector<8x128xf32>
    %298 = arith.addf %266, %297 : vector<8x128xf32>
    %c0_149 = arith.constant 0 : index
    %c9 = arith.constant 9 : index
    %299 = memref.load %arg2[%c0_149, %c9] : memref<6x10xf32, #tpu.memory_space<smem>>
    %300 = vector.broadcast %299 : f32 to vector<8x128xf32>
    %301 = arith.mulf %1, %300 : vector<8x128xf32>
    %c9_150 = arith.constant 9 : index
    %302 = memref.load %arg3[%c9_150] : memref<10xf32, #tpu.memory_space<smem>>
    %303 = vector.broadcast %302 : f32 to vector<8x128xf32>
    %304 = arith.addf %301, %303 : vector<8x128xf32>
    %c1_151 = arith.constant 1 : index
    %c9_152 = arith.constant 9 : index
    %305 = memref.load %arg2[%c1_151, %c9_152] : memref<6x10xf32, #tpu.memory_space<smem>>
    %306 = vector.broadcast %305 : f32 to vector<8x128xf32>
    %307 = arith.mulf %3, %306 : vector<8x128xf32>
    %308 = arith.addf %304, %307 : vector<8x128xf32>
    %c2_153 = arith.constant 2 : index
    %c9_154 = arith.constant 9 : index
    %309 = memref.load %arg2[%c2_153, %c9_154] : memref<6x10xf32, #tpu.memory_space<smem>>
    %310 = vector.broadcast %309 : f32 to vector<8x128xf32>
    %311 = arith.mulf %5, %310 : vector<8x128xf32>
    %312 = arith.addf %308, %311 : vector<8x128xf32>
    %c3_155 = arith.constant 3 : index
    %c9_156 = arith.constant 9 : index
    %313 = memref.load %arg2[%c3_155, %c9_156] : memref<6x10xf32, #tpu.memory_space<smem>>
    %314 = vector.broadcast %313 : f32 to vector<8x128xf32>
    %315 = arith.mulf %7, %314 : vector<8x128xf32>
    %316 = arith.addf %312, %315 : vector<8x128xf32>
    %c4_157 = arith.constant 4 : index
    %c9_158 = arith.constant 9 : index
    %317 = memref.load %arg2[%c4_157, %c9_158] : memref<6x10xf32, #tpu.memory_space<smem>>
    %318 = vector.broadcast %317 : f32 to vector<8x128xf32>
    %319 = arith.mulf %9, %318 : vector<8x128xf32>
    %320 = arith.addf %316, %319 : vector<8x128xf32>
    %c5_159 = arith.constant 5 : index
    %c9_160 = arith.constant 9 : index
    %321 = memref.load %arg2[%c5_159, %c9_160] : memref<6x10xf32, #tpu.memory_space<smem>>
    %322 = vector.broadcast %321 : f32 to vector<8x128xf32>
    %323 = arith.mulf %11, %322 : vector<8x128xf32>
    %324 = arith.addf %320, %323 : vector<8x128xf32>
    %cst_161 = arith.constant 0.000000e+00 : f32
    %325 = vector.broadcast %cst_161 : f32 to vector<8x128xf32>
    %326 = arith.maximumf %324, %325 : vector<8x128xf32>
    %c9_162 = arith.constant 9 : index
    %327 = memref.load %arg4[%c9_162] : memref<10xf32, #tpu.memory_space<smem>>
    %328 = vector.broadcast %327 : f32 to vector<8x128xf32>
    %329 = arith.mulf %326, %328 : vector<8x128xf32>
    %330 = arith.addf %298, %329 : vector<8x128xf32>
    %c0_163 = arith.constant 0 : index
    %331 = memref.load %arg5[%c0_163] : memref<1xf32, #tpu.memory_space<smem>>
    %332 = vector.broadcast %331 : f32 to vector<8x128xf32>
    %333 = arith.addf %330, %332 : vector<8x128xf32>
    %c0_164 = arith.constant 0 : index
    %c0_165 = arith.constant 0 : index
    %c0_166 = arith.constant 0 : index
    %334 = vector.load %arg6[%c0_164, %c0_165, %c0_166] : memref<1x8x128xf32, #tpu.memory_space<vmem>>, vector<1x8x128xf32>
    %335 = vector.shape_cast %334 : vector<1x8x128xf32> to vector<8x128xf32>
    %336 = vector.shape_cast %333 : vector<8x128xf32> to vector<1x8x128xf32>
    tpu.vector_store %arg6[%c0_164, %c0_165, %c0_166], %336 {strides = array<i32>} : memref<1x8x128xf32, #tpu.memory_space<vmem>>, vector<1x8x128xf32>,
    return
  }
  func.func @transform_0(%arg0: i32) -> (i32, i32, i32, i32) {
    %c0_i32 = arith.constant 0 : i32
    %c0_i32_0 = arith.constant 0 : i32
    %c0_i32_1 = arith.constant 0 : i32
    %c0_i32_2 = arith.constant 0 : i32
    return %c0_i32, %arg0, %c0_i32_0, %c0_i32_1 : i32, i32, i32, i32
  }
  func.func @transform_1(%arg0: i32) -> (i32, i32) {
    %c0_i32 = arith.constant 0 : i32
    %c0_i32_0 = arith.constant 0 : i32
    %c0_i32_1 = arith.constant 0 : i32
    return %c0_i32, %c0_i32_0 : i32, i32
  }
  func.func @transform_2(%arg0: i32) -> i32 {
    %c0_i32 = arith.constant 0 : i32
    %c0_i32_0 = arith.constant 0 : i32
    return %c0_i32 : i32
  }
  func.func @transform_3(%arg0: i32) -> i32 {
    %c0_i32 = arith.constant 0 : i32
    %c0_i32_0 = arith.constant 0 : i32
    return %c0_i32 : i32
  }
  func.func @transform_4(%arg0: i32) -> i32 {
    %c0_i32 = arith.constant 0 : i32
    %c0_i32_0 = arith.constant 0 : i32
    return %c0_i32 : i32
  }
  func.func @transform_5(%arg0: i32) -> (i32, i32, i32) {
    %c0_i32 = arith.constant 0 : i32
    %c0_i32_0 = arith.constant 0 : i32
    %c0_i32_1 = arith.constant 0 : i32
    return %arg0, %c0_i32, %c0_i32_0 : i32, i32, i32
  }
}

</mosaic_0001>

<bundles_post_ra>
// kernel: tpu_custom_call.1
= control target key start
LH: loop header
LB: loop body
LE: loop exit
PB: predicated region body
PF: predicated region fallthrough
CT: control target
= control target key end

     0   :  { %11 = vsyncpa [#allocation4], 0  ;;  %s922_s0 = inlined_call_operand.hbm [shape: f32[6,1,8,128], index: 0, kind: input, shape index: {}]   ;;  %s923_s1 = inlined_call_operand.hbm [shape: f32[6,10], index: 1, kind: input, shape index: {}]   ;;  %s924_s2 = inlined_call_operand.vmem [shape: f32[10], index: 2, kind: input, shape index: {}]   ;;  %s925_s3 = inlined_call_operand.vmem [shape: f32[10], index: 3, kind: input, shape index: {}]   ;;  %s926_s4 = inlined_call_operand.<no memory space> [shape: f32[1], index: 4, kind: input, shape index: {}]   ;;  %s927_s5 = inlined_call_operand.hbm [shape: f32[1,8,128], index: 5, kind: output, shape index: {}]  }
   0x1   :  { %12 = vsyncpa [#allocation6], 0 }
   0x2   :  { %13 = vsyncpa [#allocation7], 0 }
   0x3   :  { %14 = vsyncpa [#allocation11], 0 }
   0x4   :  { %15 = vsyncpa [#allocation5], 0  ;;  %s20_s20 = sshll.u32 %s922_s0, 4  ;;  %s597_s21 = smov [#allocation3]   ;;  %s21_s20 = int_to_ptr.hbm [resolvable:$true] %s20_s20 }
   0x5   :  { %s22_s22 = sshll.u32 %s597_s21, 4  ;;  %s34_s25 = sshll.u32 %s923_s1, 4  ;;  %s23_s22 = int_to_ptr.vmem [resolvable:$true] %s22_s22  ;;  %s35_s25 = int_to_ptr.hbm [resolvable:$true] %s34_s25 }
   0x6   :  { %s598_s26 = smov 128   ;;  %s599_s27 = smov 8  }
   0x7   :  { %28 = dma.hbm_to_vmem [thread:$0]  %s21_s20, 768, %s23_s22, [#allocation4], %s598_s26, %s598_s26, %s599_s27  }
   0x8   :  { %s600_s28 = smov [#allocation8]   ;;  %s43_s6 = sshll.u32 %s924_s2, 4  ;;  %s44_s6 = int_to_ptr.vmem [resolvable:$true] %s43_s6 }
   0x9   :  { %37 = dma.hbm_to_smem %s35_s25, 128, %s600_s28, [#allocation6]  }
   0xa   :  { %s52_s8 = sshll.u32 %s925_s3, 4  ;;  %s601_s9 = smov [#allocation9]   ;;  %s53_s8 = int_to_ptr.vmem [resolvable:$true] %s52_s8 }
   0xb   :  { %46 = dma.vmem_to_smem %s44_s6, 16, %s601_s9, [#allocation7]  }
   0xc   :  { %s602_s10 = smov [#allocation10]  }
   0xd   :  { %55 = dma.vmem_to_smem %s53_s8, 16, %s602_s10, [#allocation11]  }
   0xe   :  { %587 = dma.done.wait [#allocation4], 768  }
   0xf   :  { %588 = vsyncadd [#allocation4], 4294966528 }
  0x10   :  { %589 = dma.done.wait [#allocation6], 128  }
  0x11   :  { %590 = vsyncadd [#allocation6], 4294967168 }
  0x12   :  { %591 = dma.done.wait [#allocation7], 16  }
  0x13   :  { %592 = vsyncadd [#allocation7], 4294967280 }
  0x14   :  { %593 = dma.done.wait [#allocation11], 16  }
  0x15   :  { %594 = vsyncadd [#allocation11], 4294967280 }
  0x16   :  { %74 = sfence }
  0x17   :  { %s86_s1 = sld [smem:[#allocation8]]  ;;  %v674_v0 = vld [vmem:[#allocation3] sm:$0xff]  ;;  %v685_v4 = vld [vmem:[#allocation3 + $0x8] sm:$0xff]  ;;  %v700_v12 = vld [vmem:[#allocation3 + $0x10] sm:$0xff] }
  0x18   :  { %s646_s2 = sld [smem:[#allocation9]]  ;;  %v716_v21 = vld [vmem:[#allocation3 + $0x18] sm:$0xff]  ;;  %v735_v33 = vld [vmem:[#allocation3 + $0x20] sm:$0xff]  ;;  %v754_v46 = vld [vmem:[#allocation3 + $0x28] sm:$0xff] }
  0x19   :  { %s648_s11 = sld [smem:[#allocation8 + $0x80]] }
  0x1a   :  { %s650_s3 = sld [smem:[#allocation8 + $0x100]] }
  0x1b   :  { %s652_s12 = sld [smem:[#allocation8 + $0x180]] }
  0x1c   :  { %s654_s13 = sld [smem:[#allocation8 + $0x200]] }
  0x1d   :  { %s656_s14 = sld [smem:[#allocation8 + $0x280]]  ;;  %v87_v1 = vstv %s86_s1 }
  0x1e   :  { %s658_s15 = sld [smem:[#allocation10]]  ;;  %v88_v3 = vmul.f32 %v87_v1, %v674_v0  ;;  %v90_v5 = vstv %s646_s2 }
  0x1f   :  { %s424_s16 = sld [smem:[#allocation8 + $0x1]]  ;;  %v93_v6 = vstv %s648_s11 }
  0x20   :  { %s660_s17 = sld [smem:[#allocation9 + $0x1]]  ;;  %v91_v10 = vadd.f32 %v90_v5, %v88_v3  ;;  %v94_v11 = vmul.f32 %v93_v6, %v685_v4  ;;  %v97_v13 = vstv %s650_s3 }
  0x21   :  { %s426_s18 = sld [smem:[#allocation8 + $0x81]]  ;;  %v98_v19 = vmul.f32 %v97_v13, %v700_v12  ;;  %v101_v20 = vstv %s652_s12 }
  0x22   :  { %s662_s19 = sld [smem:[#allocation8 + $0x101]]  ;;  %v95_v18 = vadd.f32 %v94_v11, %v91_v10  ;;  %v102_v30 = vmul.f32 %v101_v20, %v716_v21  ;;  %v105_v31 = vstv %s654_s13 }
  0x23   :  { %s664_s20 = sld [smem:[#allocation8 + $0x181]]  ;;  %v106_v43 = vmul.f32 %v105_v31, %v735_v33  ;;  %v109_v44 = vstv %s656_s14 }
  0x24   :  { %s666_s21 = sld [smem:[#allocation8 + $0x201]]  ;;  %v99_v29 = vadd.f32 %v98_v19, %v95_v18  ;;  %v110_v58 = vmul.f32 %v109_v44, %v754_v46 }
  0x25   :  { %s668_s22 = sld [smem:[#allocation8 + $0x281]]  ;;  %v117_v2 = vstv %s424_s16 }
  0x26   :  { %s670_s23 = sld [smem:[#allocation10 + $0x1]]  ;;  %v118_v7 = vmul.f32 %v117_v2, %v674_v0  ;;  %v120_v8 = vstv %s660_s17  ;;  %v103_v42 = vadd.f32 %v102_v30, %v99_v29 }
  0x27   :  { %s672_s24 = sld [smem:[#allocation8 + $0x2]]  ;;  %v123_v9 = vstv %s426_s18 }
  0x28   :  { %s676_s25 = sld [smem:[#allocation9 + $0x2]]  ;;  %v121_v14 = vadd.f32 %v120_v8, %v118_v7  ;;  %v124_v15 = vmul.f32 %v123_v9, %v685_v4  ;;  %v127_v16 = vstv %s662_s19  ;;  %v107_v57 = vadd.f32 %v106_v43, %v103_v42 }
  0x29   :  { %s678_s26 = sld [smem:[#allocation8 + $0x82]]  ;;  %v128_v23 = vmul.f32 %v127_v16, %v700_v12  ;;  %v131_v24 = vstv %s664_s20 }
  0x2a   :  { %s680_s27 = sld [smem:[#allocation8 + $0x102]]  ;;  %v125_v22 = vadd.f32 %v124_v15, %v121_v14  ;;  %v132_v32 = vmul.f32 %v131_v24, %v716_v21  ;;  %v135_v35 = vstv %s666_s21  ;;  %v111_v9 = vadd.f32 %v110_v58, %v107_v57 }
  0x2b   :  { %s683_s28 = sld [smem:[#allocation8 + $0x182]]  ;;  %v136_v45 = vmul.f32 %v135_v35, %v735_v33  ;;  %v139_v48 = vstv %s668_s22 }
  0x2c   :  { %s690_s29 = sld [smem:[#allocation8 + $0x202]]  ;;  %v129_v34 = vadd.f32 %v128_v23, %v125_v22  ;;  %v140_v62 = vmul.f32 %v139_v48, %v754_v46 }
  0x2d   :  { %s693_s30 = sld [smem:[#allocation8 + $0x282]]  ;;  %v148_v17 = vstv %s672_s24 }
  0x2e   :  { %s695_s6 = sld [smem:[#allocation10 + $0x2]]  ;;  %v149_v25 = vmul.f32 %v148_v17, %v674_v0  ;;  %v151_v26 = vstv %s676_s25  ;;  %v133_v47 = vadd.f32 %v132_v32, %v129_v34 }
  0x2f   :  { %s698_s0 = sld [smem:[#allocation8 + $0x3]]  ;;  %v154_v27 = vstv %s678_s26 }
  0x30   :  { %s704_s7 = sld [smem:[#allocation9 + $0x3]]  ;;  %v152_v36 = vadd.f32 %v151_v26, %v149_v25  ;;  %v155_v37 = vmul.f32 %v154_v27, %v685_v4  ;;  %v158_v38 = vstv %s680_s27  ;;  %v137_v61 = vadd.f32 %v136_v45, %v133_v47 }
  0x31   :  { %s708_s8 = sld [smem:[#allocation8 + $0x83]]  ;;  %v159_v50 = vmul.f32 %v158_v38, %v700_v12  ;;  %v162_v51 = vstv %s683_s28  ;;  %v112_v25 = vmax.f32 %v111_v9, 0.0  ;;  %v114_v26 = vstv %s658_s15 }
  0x32   :  { %s710_s9 = sld [smem:[#allocation8 + $0x103]]  ;;  %v156_v49 = vadd.f32 %v155_v37, %v152_v36  ;;  %v163_v1 = vmul.f32 %v162_v51, %v716_v21  ;;  %v166_v2 = vstv %s690_s29  ;;  %v141_v11 = vadd.f32 %v140_v62, %v137_v61 }
  0x33   :  { %s714_s10 = sld [smem:[#allocation8 + $0x183]]  ;;  %v167_v14 = vmul.f32 %v166_v2, %v735_v33  ;;  %v170_v15 = vstv %s693_s30  ;;  %v144_v38 = vstv %s670_s23  ;;  %v115_v45 = vmul.f32 %v114_v26, %v112_v25 }
  0x34   :  { %s721_s1 = sld [smem:[#allocation8 + $0x203]]  ;;  %v160_v63 = vadd.f32 %v159_v50, %v156_v49  ;;  %v171_v30 = vmul.f32 %v170_v15, %v754_v46  ;;  %v142_v34 = vmax.f32 %v141_v11, 0.0  ;;  %v175_v2 = vstv %s695_s6 }
  0x35   :  { %s725_s2 = sld [smem:[#allocation8 + $0x283]]  ;;  %v179_v28 = vstv %s698_s0 }
  0x36   :  { %s728_s11 = sld [smem:[#allocation10 + $0x3]]  ;;  %v180_v39 = vmul.f32 %v179_v28, %v674_v0  ;;  %v182_v40 = vstv %s704_s7  ;;  %v164_v13 = vadd.f32 %v163_v1, %v160_v63  ;;  %v145_v49 = vmul.f32 %v144_v38, %v142_v34 }
  0x37   :  { %s733_s3 = sld [smem:[#allocation8 + $0x4]]  ;;  %v185_v41 = vstv %s708_s8 }
  0x38   :  { %s739_s12 = sld [smem:[#allocation9 + $0x4]]  ;;  %v183_v52 = vadd.f32 %v182_v40, %v180_v39  ;;  %v186_v53 = vmul.f32 %v185_v41, %v685_v4  ;;  %v189_v55 = vstv %s710_s9  ;;  %v168_v29 = vadd.f32 %v167_v14, %v164_v13 }
  0x39   :  { %s743_s13 = sld [smem:[#allocation8 + $0x84]]  ;;  %v190_v5 = vmul.f32 %v189_v55, %v700_v12  ;;  %v193_v6 = vstv %s714_s10 }
  0x3a   :  { %s747_s16 = sld [smem:[#allocation8 + $0x104]]  ;;  %v187_v3 = vadd.f32 %v186_v53, %v183_v52  ;;  %v194_v17 = vmul.f32 %v193_v6, %v716_v21  ;;  %v197_v18 = vstv %s721_s1  ;;  %v172_v47 = vadd.f32 %v171_v30, %v168_v29 }
  0x3b   :  { %s752_s17 = sld [smem:[#allocation8 + $0x184]]  ;;  %v198_v36 = vmul.f32 %v197_v18, %v735_v33  ;;  %v201_v39 = vstv %s725_s2 }
  0x3c   :  { %s758_s18 = sld [smem:[#allocation8 + $0x204]]  ;;  %v191_v16 = vadd.f32 %v190_v5, %v187_v3  ;;  %v202_v51 = vmul.f32 %v201_v39, %v754_v46  ;;  %v173_v61 = vmax.f32 %v172_v47, 0.0 }
  0x3d   :  { %v210_v54 = vstv %s733_s3  ;;  %s763_s14 = sld [smem:[#allocation8 + $0x284]] }
  0x3e   :  { %v211_v56 = vmul.f32 %v210_v54, %v674_v0  ;;  %s767_s19 = sld [smem:[#allocation10 + $0x4]]  ;;  %v213_v59 = vstv %s739_s12  ;;  %v195_v35 = vadd.f32 %v194_v17, %v191_v16  ;;  %v146_v16 = vadd.f32 %v145_v49, %v115_v45 }
  0x3f   :  { %v216_v60 = vstv %s743_s13  ;;  %s456_s20 = sld [smem:[#allocation8 + $0x5]]  ;;  %v176_v17 = vmul.f32 %v175_v2, %v173_v61 }
  0x40   :  { %s774_s21 = sld [smem:[#allocation9 + $0x5]]  ;;  %v214_v7 = vadd.f32 %v213_v59, %v211_v56  ;;  %v217_v8 = vmul.f32 %v216_v60, %v685_v4  ;;  %v220_v10 = vstv %s747_s16  ;;  %v199_v50 = vadd.f32 %v198_v36, %v195_v35 }
  0x41   :  { %s778_s22 = sld [smem:[#allocation8 + $0x85]]  ;;  %v221_v22 = vmul.f32 %v220_v10, %v700_v12  ;;  %v224_v27 = vstv %s752_s17 }
  0x42   :  { %s782_s24 = sld [smem:[#allocation8 + $0x105]]  ;;  %v218_v20 = vadd.f32 %v217_v8, %v214_v7  ;;  %v225_v41 = vmul.f32 %v224_v27, %v716_v21  ;;  %v228_v42 = vstv %s758_s18  ;;  %v203_v3 = vadd.f32 %v202_v51, %v199_v50 }
  0x43   :  { %s785_s25 = sld [smem:[#allocation8 + $0x185]]  ;;  %v229_v54 = vmul.f32 %v228_v42, %v735_v33  ;;  %v232_v57 = vstv %s763_s14 }
  0x44   :  { %s789_s26 = sld [smem:[#allocation8 + $0x205]]  ;;  %v222_v40 = vadd.f32 %v221_v22, %v218_v20  ;;  %v233_v8 = vmul.f32 %v232_v57, %v754_v46  ;;  %v204_v20 = vmax.f32 %v203_v3, 0.0  ;;  %v206_v22 = vstv %s728_s11 }
  0x45   :  { %v241_v19 = vstv %s456_s20  ;;  %s793_s27 = sld [smem:[#allocation8 + $0x285]]  ;;  %v237_v38 = vstv %s767_s19 }
  0x46   :  { %v242_v23 = vmul.f32 %v241_v19, %v674_v0  ;;  %v244_v24 = vstv %s774_s21  ;;  %s798_s28 = sld [smem:[#allocation10 + $0x5]]  ;;  %v226_v53 = vadd.f32 %v225_v41, %v222_v40 }
  0x47   :  { %v247_v28 = vstv %s778_s22  ;;  %s803_s29 = sld [smem:[#allocation8 + $0x6]] }
  0x48   :  { %v245_v31 = vadd.f32 %v244_v24, %v242_v23  ;;  %v248_v32 = vmul.f32 %v247_v28, %v685_v4  ;;  %s807_s30 = sld [smem:[#allocation9 + $0x6]]  ;;  %v251_v37 = vstv %s782_s24  ;;  %v230_v7 = vadd.f32 %v229_v54, %v226_v53 }
  0x49   :  { %s811_s15 = sld [smem:[#allocation8 + $0x86]]  ;;  %v252_v44 = vmul.f32 %v251_v37, %v700_v12  ;;  %v255_v48 = vstv %s785_s25  ;;  %v207_v37 = vmul.f32 %v206_v22, %v204_v20 }
  0x4a   :  { %s816_s0 = sld [smem:[#allocation8 + $0x106]]  ;;  %v249_v43 = vadd.f32 %v248_v32, %v245_v31  ;;  %v256_v59 = vmul.f32 %v255_v48, %v716_v21  ;;  %v259_v62 = vstv %s789_s26  ;;  %v234_v24 = vadd.f32 %v233_v8, %v230_v7 }
  0x4b   :  { %s820_s7 = sld [smem:[#allocation8 + $0x186]]  ;;  %v260_v13 = vmul.f32 %v259_v62, %v735_v33  ;;  %v263_v14 = vstv %s793_s27  ;;  %v177_v32 = vadd.f32 %v176_v17, %v146_v16 }
  0x4c   :  { %s823_s23 = sld [smem:[#allocation8 + $0x206]]  ;;  %v253_v58 = vadd.f32 %v252_v44, %v249_v43  ;;  %v264_v25 = vmul.f32 %v263_v14, %v754_v46  ;;  %v235_v41 = vmax.f32 %v234_v24, 0.0 }
  0x4d   :  { %v272_v52 = vstv %s803_s29  ;;  %s827_s8 = sld [smem:[#allocation8 + $0x286]] }
  0x4e   :  { %v273_v55 = vmul.f32 %v272_v52, %v674_v0  ;;  %v275_v56 = vstv %s807_s30  ;;  %s832_s9 = sld [smem:[#allocation10 + $0x6]]  ;;  %v257_v11 = vadd.f32 %v256_v59, %v253_v58  ;;  %v208_v52 = vadd.f32 %v207_v37, %v177_v32 }
  0x4f   :  { %v278_v60 = vstv %s811_s15  ;;  %s837_s10 = sld [smem:[#allocation8 + $0x7]] }
  0x50   :  { %v276_v63 = vadd.f32 %v275_v56, %v273_v55  ;;  %v279_v1 = vmul.f32 %v278_v60, %v685_v4  ;;  %s841_s1 = sld [smem:[#allocation9 + $0x7]]  ;;  %v282_v5 = vstv %s816_s0  ;;  %v261_v28 = vadd.f32 %v260_v13, %v257_v11 }
  0x51   :  { %v286_v6 = vstv %s820_s7  ;;  %s846_s2 = sld [smem:[#allocation8 + $0x87]]  ;;  %v283_v10 = vmul.f32 %v282_v5, %v700_v12  ;;  %v238_v55 = vmul.f32 %v237_v38, %v235_v41  ;;  %v268_v60 = vstv %s798_s28 }
  0x52   :  { %v280_v9 = vadd.f32 %v279_v1, %v276_v63  ;;  %s850_s3 = sld [smem:[#allocation8 + $0x107]]  ;;  %v287_v15 = vmul.f32 %v286_v6, %v716_v21  ;;  %v290_v19 = vstv %s823_s23  ;;  %v265_v45 = vadd.f32 %v264_v25, %v261_v28  ;;  %s603_s23 = smov [#allocation12]  }
  0x53   :  { %s855_s6 = sld [smem:[#allocation8 + $0x187]]  ;;  %v291_v30 = vmul.f32 %v290_v19, %v735_v33  ;;  %v294_v34 = vstv %s827_s8  ;;  %v239_v7 = vadd.f32 %v238_v55, %v208_v52  ;;  %s404_s8 = sshll.u32 %s603_s23, 4  ;;  %s405_s8 = int_to_ptr.vmem [resolvable:$true] %s404_s8 }
  0x54   :  { %v284_v18 = vadd.f32 %v283_v10, %v280_v9  ;;  %s858_s12 = sld [smem:[#allocation8 + $0x207]]  ;;  %v295_v48 = vmul.f32 %v294_v34, %v754_v46  ;;  %v266_v59 = vmax.f32 %v265_v45, 0.0  ;;  %v299_v16 = vstv %s832_s9 }
  0x55   :  { %v303_v23 = vstv %s837_s10  ;;  %s862_s13 = sld [smem:[#allocation8 + $0x287]] }
  0x56   :  { %v304_v26 = vmul.f32 %v303_v23, %v674_v0  ;;  %v306_v27 = vstv %s841_s1  ;;  %s867_s16 = sld [smem:[#allocation10 + $0x7]]  ;;  %v288_v29 = vadd.f32 %v287_v15, %v284_v18  ;;  %v269_v11 = vmul.f32 %v268_v60, %v266_v59  ;;  %s406_s1 = sshll.u32 %s927_s5, 4  ;;  %s407_s1 = int_to_ptr.hbm [resolvable:$true] %s406_s1 }
  0x57   :  { %v309_v31 = vstv %s846_s2  ;;  %s480_s11 = sld [smem:[#allocation8 + $0x8]] }
  0x58   :  { %v307_v35 = vadd.f32 %v306_v27, %v304_v26  ;;  %v310_v36 = vmul.f32 %v309_v31, %v685_v4  ;;  %s873_s17 = sld [smem:[#allocation9 + $0x8]]  ;;  %v313_v39 = vstv %s850_s3  ;;  %v292_v47 = vadd.f32 %v291_v30, %v288_v29 }
  0x59   :  { %v317_v40 = vstv %s855_s6  ;;  %s878_s18 = sld [smem:[#allocation8 + $0x88]]  ;;  %v314_v43 = vmul.f32 %v313_v39, %v700_v12  ;;  %v270_v26 = vadd.f32 %v269_v11, %v239_v7 }
  0x5a   :  { %v311_v42 = vadd.f32 %v310_v36, %v307_v35  ;;  %v318_v44 = vmul.f32 %v317_v40, %v716_v21  ;;  %s882_s14 = sld [smem:[#allocation8 + $0x108]]  ;;  %v321_v49 = vstv %s858_s12  ;;  %v296_v61 = vadd.f32 %v295_v48, %v292_v47 }
  0x5b   :  { %s484_s19 = sld [smem:[#allocation8 + $0x188]]  ;;  %v322_v51 = vmul.f32 %v321_v49, %v735_v33  ;;  %v325_v53 = vstv %s862_s13 }
  0x5c   :  { %v315_v50 = vadd.f32 %v314_v43, %v311_v42  ;;  %s887_s20 = sld [smem:[#allocation8 + $0x208]]  ;;  %v326_v1 = vmul.f32 %v325_v53, %v754_v46  ;;  %v297_v13 = vmax.f32 %v296_v61, 0.0  ;;  %v330_v34 = vstv %s867_s16 }
  0x5d   :  { %v334_v54 = vstv %s480_s11  ;;  %s890_s21 = sld [smem:[#allocation8 + $0x288]] }
  0x5e   :  { %v319_v56 = vadd.f32 %v318_v44, %v315_v50  ;;  %v335_v57 = vmul.f32 %v334_v54, %v674_v0  ;;  %v337_v58 = vstv %s873_s17  ;;  %s894_s22 = sld [smem:[#allocation10 + $0x8]]  ;;  %v300_v27 = vmul.f32 %v299_v16, %v297_v13 }
  0x5f   :  { %v340_v62 = vstv %s878_s18  ;;  %s488_s24 = sld [smem:[#allocation8 + $0x9]] }
  0x60   :  { %v323_v63 = vadd.f32 %v322_v51, %v319_v56  ;;  %v338_v2 = vadd.f32 %v337_v58, %v335_v57  ;;  %v341_v3 = vmul.f32 %v340_v62, %v685_v4  ;;  %s489_s25 = sld [smem:[#allocation9 + $0x9]]  ;;  %v344_v5 = vstv %s882_s14 }
  0x61   :  { %v348_v6 = vstv %s484_s19  ;;  %s490_s26 = sld [smem:[#allocation8 + $0x89]]  ;;  %v345_v9 = vmul.f32 %v344_v5, %v700_v12  ;;  %v396_v56 = vstv %s926_s4 }
  0x62   :  { %v342_v8 = vadd.f32 %v341_v3, %v338_v2  ;;  %v349_v10 = vmul.f32 %v348_v6, %v716_v21  ;;  %s491_s27 = sld [smem:[#allocation8 + $0x109]]  ;;  %v352_v14 = vstv %s887_s20  ;;  %v327_v17 = vadd.f32 %v326_v1, %v323_v63 }
  0x63   :  { %v356_v15 = vstv %s890_s21  ;;  %s492_s28 = sld [smem:[#allocation8 + $0x189]]  ;;  %v353_v19 = vmul.f32 %v352_v14, %v735_v33 }
  0x64   :  { %v346_v18 = vadd.f32 %v345_v9, %v342_v8  ;;  %s493_s29 = sld [smem:[#allocation8 + $0x209]]  ;;  %v357_v23 = vmul.f32 %v356_v15, %v754_v46  ;;  %v328_v29 = vmax.f32 %v327_v17, 0.0 }
  0x65   :  { %v365_v20 = vstv %s488_s24  ;;  %s494_s30 = sld [smem:[#allocation8 + $0x289]] }
  0x66   :  { %v350_v22 = vadd.f32 %v349_v10, %v346_v18  ;;  %v366_v24 = vmul.f32 %v365_v20, %v674_v0  ;;  %v368_v25 = vstv %s489_s25  ;;  %v301_v0 = vadd.f32 %v300_v27, %v270_v26  ;;  %s495_s15 = sld [smem:[#allocation10 + $0x9]] }
  0x67   :  { %v371_v28 = vstv %s490_s26  ;;  %v331_v43 = vmul.f32 %v330_v34, %v328_v29 }
  0x68   :  { %v354_v30 = vadd.f32 %v353_v19, %v350_v22  ;;  %v369_v31 = vadd.f32 %v368_v25, %v366_v24  ;;  %v372_v32 = vmul.f32 %v371_v28, %v685_v4  ;;  %v375_v35 = vstv %s491_s27 }
  0x69   :  { %v379_v36 = vstv %s492_s28  ;;  %v376_v39 = vmul.f32 %v375_v35, %v700_v12  ;;  %v361_v4 = vstv %s894_s22  ;;  %v332_v50 = vadd.f32 %v331_v43, %v301_v0 }
  0x6a   :  { %v358_v37 = vadd.f32 %v357_v23, %v354_v30  ;;  %v373_v38 = vadd.f32 %v372_v32, %v369_v31  ;;  %v380_v40 = vmul.f32 %v379_v36, %v716_v21  ;;  %v383_v41 = vstv %s493_s29 }
  0x6b   :  { %v387_v42 = vstv %s494_s30  ;;  %v384_v47 = vmul.f32 %v383_v41, %v735_v33 }
  0x6c   :  { %v359_v44 = vmax.f32 %v358_v37, 0.0  ;;  %v377_v45 = vadd.f32 %v376_v39, %v373_v38  ;;  %v388_v49 = vmul.f32 %v387_v42, %v754_v46  ;;  %v392_v12 = vstv %s495_s15 }
  0x6e   :  { %v381_v48 = vadd.f32 %v380_v40, %v377_v45  ;;  %v362_v51 = vmul.f32 %v361_v4, %v359_v44 }
  0x70   :  { %v385_v52 = vadd.f32 %v384_v47, %v381_v48  ;;  %v363_v54 = vadd.f32 %v362_v51, %v332_v50 }
  0x72   :  { %v389_v53 = vadd.f32 %v388_v49, %v385_v52 }
  0x74   :  { %v390_v21 = vmax.f32 %v389_v53, 0.0 }
  0x76   :  { %v393_v55 = vmul.f32 %v392_v12, %v390_v21 }
  0x78   :  { %v394_v33 = vadd.f32 %v393_v55, %v363_v54 }
  0x7a   :  { %v397_v46 = vadd.f32 %v396_v56, %v394_v33 }
  0x7c   :  { %398 = vst [vmem:[#allocation12] sm:$0xff] %v397_v46 }
  0x7d   :  { %409 = dma.vmem_to_hbm [thread:$0]  %s405_s8, 128, %s407_s1, [#allocation5]  }
  0x7e   :  { %595 = dma.done.wait [#allocation5], 128  }
  0x7f   :  { %596 = vsyncadd [#allocation5], 4294967168 }
  0x80   :  { %414 = vsyncpa [#allocation4], 1 }
  0x81   :  { %415 = vsyncpa [#allocation5], 1 }
  0x82   :  { %416 = vsyncpa [#allocation6], 1 }
  0x83   :  { %417 = vsyncpa [#allocation7], 1 }
  0x84   :  { %418 = vsyncpa [#allocation11], 1 }

</bundles_post_ra>
